<compile_context>
chip_gen: v6e
topology: v6e:2x2x1
jax: 0.10.0
libtpu: 0.0.40
codegen_flags: <defaults>
</compile_context>

<pallas_src>
import functools

import jax
import jax.numpy as jnp
from jax import lax
from jax.experimental import pallas as pl
from jax.experimental.pallas import tpu as pltpu


def _round_up(n, m):
    return (n + m - 1) // m * m


def mlp_kernel(x_ref, w1_ref, b1_ref, w2_ref, b2_ref, alpha_ref, o_ref):
    # x:  (tile_m, Kp)   compute dtype (bf16 or f32)
    # w1: (Fp, Kp)       PyTorch (out_features, in_features) layout
    # w2: (Op, Fp)       PyTorch (out_features, in_features) layout
    # b1: (1, Fp) f32 ; b2: (1, Op) f32 ; alpha: (1, 1) f32 in SMEM
    dn = (((1,), (1,)), ((), ()))  # contract the last axis of both operands (== x @ W^T)

    # linear_pre (MXU, f32 accumulation)
    h = lax.dot_general(x_ref[...], w1_ref[...], dn,
                        preferred_element_type=jnp.float32)
    h = h + b1_ref[...]

    # PReLU with a single shared alpha (PyTorch nn.PReLU() default init 0.25)
    alpha = alpha_ref[0, 0]
    h = jnp.where(h >= 0.0, h, alpha * h)

    # linear_out (cast the intermediate back to the MXU dtype; accumulate in f32)
    o = lax.dot_general(h.astype(w2_ref.dtype), w2_ref[...], dn,
                        preferred_element_type=jnp.float32)
    o = o + b2_ref[...]

    # F.normalize(p=2, dim=-1): o / max(||o||, 1e-12)  ==  o * rsqrt(max(||o||^2, 1e-24))
    ss = jnp.sum(o * o, axis=-1, keepdims=True)
    inv = lax.rsqrt(jnp.maximum(ss, 1e-24))
    o_ref[...] = (o * inv).astype(o_ref.dtype)


@functools.partial(jax.jit, static_argnames=("tile_m", "compute_dtype"))
def mlp_forward(x, w_pre, b_pre, w_out, b_out, alpha, *,
                tile_m=256, compute_dtype=jnp.bfloat16):
    N, input_dim = x.shape
    feature_dim, _ = w_pre.shape      # PyTorch Linear layout: (out_features, in_features)
    output_dim, _ = w_out.shape

    cdt = jnp.dtype(compute_dtype)
    out_dtype = x.dtype

    # Lane-align every last dim to 128 (unmasked, full-width vregs / MXU) and pad rows
    # to the row tile. Zero padding is numerically inert for this forward pass.
    kp = _round_up(input_dim, 128)
    fp = _round_up(feature_dim, 128)
    op = _round_up(output_dim, 128)
    tile_m = min(tile_m, _round_up(N, 8))      # don't over-tile tiny batches
    np_rows = _round_up(N, tile_m)

    xp = jnp.zeros((np_rows, kp), cdt).at[:N, :input_dim].set(x.astype(cdt))
    w1p = jnp.zeros((fp, kp), cdt).at[:feature_dim, :input_dim].set(w_pre.astype(cdt))
    w2p = jnp.zeros((op, fp), cdt).at[:output_dim, :feature_dim].set(w_out.astype(cdt))
    b1p = jnp.zeros((1, fp), jnp.float32).at[0, :feature_dim].set(b_pre.astype(jnp.float32))
    b2p = jnp.zeros((1, op), jnp.float32).at[0, :output_dim].set(b_out.astype(jnp.float32))
    alpha2d = jnp.asarray(alpha, jnp.float32).reshape(1, 1)

    grid = (np_rows // tile_m,)

    # VMEM budget: double-buffered x / out tiles, (double-buffered) weights & biases,
    # plus the f32 h intermediate. Sized so large feature dims still fit v7x's 64 MiB.
    isz = cdt.itemsize
    vmem_need = (2 * tile_m * kp * isz            # x tiles (pipelined)
                 + 2 * tile_m * op * 4            # out tiles (f32)
                 + 2 * (fp * kp + op * fp) * isz  # weights (constant index_map)
                 + 2 * (fp + op) * 4              # biases
                 + tile_m * fp * 4)               # h intermediate
    vmem_limit = int(min(max(2 * vmem_need, 32 * 2 ** 20), 96 * 2 ** 20))

    cost = pl.CostEstimate(
        flops=2 * np_rows * (kp * fp + fp * op),
        transcendentals=np_rows,  # one rsqrt per row
        bytes_accessed=(xp.size * isz + w1p.size * isz + w2p.size * isz
                        + b1p.size * 4 + b2p.size * 4 + np_rows * op * 4),
    )

    out = pl.pallas_call(
        mlp_kernel,
        out_shape=jax.ShapeDtypeStruct((np_rows, op), out_dtype),
        grid_spec=pltpu.PrefetchScalarGridSpec(
            num_scalar_prefetch=0,
            grid=grid,
            in_specs=[
                pl.BlockSpec((tile_m, kp), lambda i: (i, 0)),
                pl.BlockSpec((fp, kp), lambda i: (0, 0)),   # constant across grid steps
                pl.BlockSpec((1, fp), lambda i: (0, 0)),
                pl.BlockSpec((op, fp), lambda i: (0, 0)),
                pl.BlockSpec((1, op), lambda i: (0, 0)),
                pl.BlockSpec((1, 1), lambda i: (0, 0), memory_space=pltpu.SMEM),
            ],
            out_specs=pl.BlockSpec((tile_m, op), lambda i: (i, 0)),
        ),
        compiler_params=pltpu.CompilerParams(
            dimension_semantics=("parallel",),   # row tiles shard across v7x's 2 TCs
            vmem_limit_bytes=vmem_limit,
        ),
        cost_estimate=cost,
    )(xp, w1p, b1p, w2p, b2p, alpha2d)

    # Padded feature/output columns are exact zeros, so the in-kernel L2 norm is
    # unaffected; slice off the row/column padding before returning.
    return out[:N, :output_dim]


def reference_forward(x, w_pre, b_pre, w_out, b_out, alpha):
    h = x @ w_pre.T + b_pre
    h = jnp.where(h >= 0.0, h, alpha * h)
    o = h @ w_out.T + b_out
    nrm = jnp.sqrt(jnp.sum(o * o, axis=-1, keepdims=True))
    return o / jnp.maximum(nrm, 1e-12)


if __name__ == "__main__":
    # Small shapes consistent with the module's Linear layers.
    N, input_dim, feature_dim, output_dim = 8, 16, 32, 8

    key = jax.random.PRNGKey(0)
    kx, kw1, kb1, kw2, kb2 = jax.random.split(key, 5)

    x = jax.random.normal(kx, (N, input_dim), dtype=jnp.float32)
    # Deterministic synthetic parameters (PyTorch Linear weight layout: (out, in)).
    w_pre = jax.random.normal(kw1, (feature_dim, input_dim), jnp.float32) * 0.1
    b_pre = jax.random.normal(kb1, (feature_dim,), jnp.float32) * 0.1
    w_out = jax.random.normal(kw2, (output_dim, feature_dim), jnp.float32) * 0.1
    b_out = jax.random.normal(kb2, (output_dim,), jnp.float32) * 0.1
    alpha = jnp.float32(0.25)   # nn.PReLU() default

    y_ref = reference_forward(x, w_pre, b_pre, w_out, b_out, alpha)

    # Full-precision path: exact parity with the f32 reference.
    y_f32 = mlp_forward(x, w_pre, b_pre, w_out, b_out, alpha,
                        compute_dtype=jnp.float32)
    y_f32 = jax.block_until_ready(y_f32)
    assert y_f32.shape == (N, output_dim)
    assert jnp.allclose(y_f32, y_ref, atol=1e-4, rtol=1e-4), "f32 mismatch vs reference"

    # Default (bf16 MXU inputs, f32 accumulation): looser tolerance by design.
    y_bf16 = mlp_forward(x, w_pre, b_pre, w_out, b_out, alpha)
    y_bf16 = jax.block_until_ready(y_bf16)
    assert y_bf16.shape == (N, output_dim)
    assert jnp.allclose(y_bf16, y_ref, atol=5e-2, rtol=5e-2), "bf16 mismatch vs reference"

    print("KERNEL_OK")
</pallas_src>

<mosaic_0001>
module attributes {stable_mosaic.version = 11 : i64} {
  func.func @mlp_kernel(%arg0: i32, %arg1: memref<8x128xf32, #tpu.memory_space<vmem>>, %arg2: memref<128x128xf32, #tpu.memory_space<vmem>>, %arg3: memref<1x128xf32, #tpu.memory_space<vmem>>, %arg4: memref<128x128xf32, #tpu.memory_space<vmem>>, %arg5: memref<1x128xf32, #tpu.memory_space<vmem>>, %arg6: memref<1x1xf32, #tpu.memory_space<smem>>, %arg7: memref<8x128xf32, #tpu.memory_space<vmem>>) attributes {dimension_semantics = [#tpu.dimension_semantics<parallel>], iteration_bounds = array<i64: 1>, scalar_prefetch = 0 : i64, scratch_operands = 0 : i64, tpu.core_type = #tpu.core_type<tc>, window_params = [{transform_indices = @transform_0, window_bounds = array<i64: 8, 128>}, {pipeline_mode = #tpu.pipeline_mode<synchronous>, transform_indices = @transform_1, window_bounds = array<i64: 128, 128>}, {pipeline_mode = #tpu.pipeline_mode<synchronous>, transform_indices = @transform_2, window_bounds = array<i64: 1, 128>}, {pipeline_mode = #tpu.pipeline_mode<synchronous>, transform_indices = @transform_3, window_bounds = array<i64: 128, 128>}, {pipeline_mode = #tpu.pipeline_mode<synchronous>, transform_indices = @transform_4, window_bounds = array<i64: 1, 128>}, {transform_indices = @transform_5, window_bounds = array<i64: 1, 1>}, {transform_indices = @transform_6, window_bounds = array<i64: 8, 128>}]} {
    %c0 = arith.constant 0 : index
    %c0_0 = arith.constant 0 : index
    %0 = vector.load %arg1[%c0, %c0_0] : memref<8x128xf32, #tpu.memory_space<vmem>>, vector<8x128xf32>
    %c0_1 = arith.constant 0 : index
    %c0_2 = arith.constant 0 : index
    %1 = vector.load %arg2[%c0_1, %c0_2] : memref<128x128xf32, #tpu.memory_space<vmem>>, vector<128x128xf32>
    %cst = arith.constant dense<0.000000e+00> : vector<8x128xf32>
    %2 = tpu.matmul %0, %1, %cst {dimension_numbers = #tpu.dot_dimension_numbers<[1], [1], [0], [0], [0, 0, 1, 0], [], []>} : vector<8x128xf32>, vector<128x128xf32>, vector<8x128xf32> -> vector<8x128xf32>
    %c0_3 = arith.constant 0 : index
    %c0_4 = arith.constant 0 : index
    %3 = vector.load %arg3[%c0_3, %c0_4] : memref<1x128xf32, #tpu.memory_space<vmem>>, vector<1x128xf32>
    %4 = vector.broadcast %3 : vector<1x128xf32> to vector<8x128xf32>
    %5 = arith.addf %2, %4 : vector<8x128xf32>
    %c0_5 = arith.constant 0 : index
    %c0_6 = arith.constant 0 : index
    %6 = memref.load %arg6[%c0_5, %c0_6] : memref<1x1xf32, #tpu.memory_space<smem>>
    %cst_7 = arith.constant 0.000000e+00 : f32
    %7 = vector.broadcast %cst_7 : f32 to vector<8x128xf32>
    %8 = arith.cmpf oge, %5, %7 : vector<8x128xf32>
    %9 = vector.broadcast %6 : f32 to vector<8x128xf32>
    %10 = arith.mulf %9, %5 : vector<8x128xf32>
    %11 = arith.select %8, %5, %10 : vector<8x128xi1>, vector<8x128xf32>
    %c0_8 = arith.constant 0 : index
    %c0_9 = arith.constant 0 : index
    %12 = vector.load %arg4[%c0_8, %c0_9] : memref<128x128xf32, #tpu.memory_space<vmem>>, vector<128x128xf32>
    %cst_10 = arith.constant dense<0.000000e+00> : vector<8x128xf32>
    %13 = tpu.matmul %11, %12, %cst_10 {dimension_numbers = #tpu.dot_dimension_numbers<[1], [1], [0], [0], [0, 0, 1, 0], [], []>} : vector<8x128xf32>, vector<128x128xf32>, vector<8x128xf32> -> vector<8x128xf32>
    %c0_11 = arith.constant 0 : index
    %c0_12 = arith.constant 0 : index
    %14 = vector.load %arg5[%c0_11, %c0_12] : memref<1x128xf32, #tpu.memory_space<vmem>>, vector<1x128xf32>
    %15 = vector.broadcast %14 : vector<1x128xf32> to vector<8x128xf32>
    %16 = arith.addf %13, %15 : vector<8x128xf32>
    %17 = arith.mulf %16, %16 : vector<8x128xf32>
    %cst_13 = arith.constant dense<0.000000e+00> : vector<8xf32>
    %18 = vector.multi_reduction <add>, %17, %cst_13 [1] : vector<8x128xf32> to vector<8xf32>
    %19 = vector.shape_cast %18 : vector<8xf32> to vector<8x1xf32>
    %cst_14 = arith.constant 1.000000e-24 : f32
    %20 = vector.broadcast %cst_14 : f32 to vector<8x1xf32>
    %21 = arith.maximumf %19, %20 : vector<8x1xf32>
    %22 = math.rsqrt %21 : vector<8x1xf32>
    %23 = vector.broadcast %22 : vector<8x1xf32> to vector<8x128xf32>
    %24 = arith.mulf %16, %23 : vector<8x128xf32>
    %c0_15 = arith.constant 0 : index
    %c0_16 = arith.constant 0 : index
    %25 = vector.load %arg7[%c0_15, %c0_16] : memref<8x128xf32, #tpu.memory_space<vmem>>, vector<8x128xf32>
    tpu.vector_store %arg7[%c0_15, %c0_16], %24 {strides = array<i32>} : memref<8x128xf32, #tpu.memory_space<vmem>>, vector<8x128xf32>,
    return
  }
  func.func @transform_0(%arg0: i32) -> (i32, i32) {
    %c0_i32 = arith.constant 0 : i32
    %c0_i32_0 = arith.constant 0 : i32
    return %arg0, %c0_i32 : i32, i32
  }
  func.func @transform_1(%arg0: i32) -> (i32, i32) {
    %c0_i32 = arith.constant 0 : i32
    %c0_i32_0 = arith.constant 0 : i32
    %c0_i32_1 = arith.constant 0 : i32
    return %c0_i32, %c0_i32_0 : i32, i32
  }
  func.func @transform_2(%arg0: i32) -> (i32, i32) {
    %c0_i32 = arith.constant 0 : i32
    %c0_i32_0 = arith.constant 0 : i32
    %c0_i32_1 = arith.constant 0 : i32
    return %c0_i32, %c0_i32_0 : i32, i32
  }
  func.func @transform_3(%arg0: i32) -> (i32, i32) {
    %c0_i32 = arith.constant 0 : i32
    %c0_i32_0 = arith.constant 0 : i32
    %c0_i32_1 = arith.constant 0 : i32
    return %c0_i32, %c0_i32_0 : i32, i32
  }
  func.func @transform_4(%arg0: i32) -> (i32, i32) {
    %c0_i32 = arith.constant 0 : i32
    %c0_i32_0 = arith.constant 0 : i32
    %c0_i32_1 = arith.constant 0 : i32
    return %c0_i32, %c0_i32_0 : i32, i32
  }
  func.func @transform_5(%arg0: i32) -> (i32, i32) {
    %c0_i32 = arith.constant 0 : i32
    %c0_i32_0 = arith.constant 0 : i32
    %c0_i32_1 = arith.constant 0 : i32
    return %c0_i32, %c0_i32_0 : i32, i32
  }
  func.func @transform_6(%arg0: i32) -> (i32, i32) {
    %c0_i32 = arith.constant 0 : i32
    %c0_i32_0 = arith.constant 0 : i32
    return %arg0, %c0_i32 : i32, i32
  }
}

</mosaic_0001>

<bundles_post_ra>
// kernel: mlp_forward.1
= control target key start
LH: loop header
LB: loop body
LE: loop exit
PB: predicated region body
PF: predicated region fallthrough
CT: control target
= control target key end

     0   :  { %v371_v1 = vmov 0.0   ;;  %vm372_vm0 = vmmov 0   ;;  %s554_s0 = inlined_call_operand.vmem [shape: f32[8,128], index: 0, kind: input, shape index: {}]   ;;  %s555_s1 = inlined_call_operand.vmem [shape: f32[128,128], index: 1, kind: input, shape index: {}]   ;;  %s556_s2 = inlined_call_operand.vmem [shape: f32[1,128], index: 2, kind: input, shape index: {}]   ;;  %s557_s3 = inlined_call_operand.vmem [shape: f32[128,128], index: 3, kind: input, shape index: {}]   ;;  %s558_s4 = inlined_call_operand.vmem [shape: f32[1,128], index: 4, kind: input, shape index: {}]   ;;  %s559_s5 = inlined_call_operand.<no memory space> [shape: f32[1,1], index: 5, kind: input, shape index: {}]   ;;  %s560_s6 = inlined_call_operand.hbm [shape: f32[8,128], index: 6, kind: output, shape index: {}]  }
   0x1   :  { %v41_v0 = vld [vmem:[%s555_s1 + $0x78] sm:$0xff]  ;;  %274 = vmatprep.subr.mxu0 %v371_v1  ;;  %306 = vmatprep.mubr.msk.f32.mxu0 %vm372_vm0, %v371_v1  ;;  %v40_v2 = vld [vmem:[%s555_s1 + $0x70] sm:$0xff]  ;;  %v39_v4 = vld [vmem:[%s555_s1 + $0x68] sm:$0xff] }
   0x2   :  { %275 = vmatpush3.xpose.msra.mxu0 %v41_v0  ;;  %309 = vmatprep.subr.mxu1 %v371_v1  ;;  %v139_v3 = vld [vmem:[%s557_s3 + $0x78] sm:$0xff]  ;;  %v138_v5 = vld [vmem:[%s557_s3 + $0x70] sm:$0xff]  ;;  %v38_v6 = vld [vmem:[%s555_s1 + $0x60] sm:$0xff] }
   0x3   :  { %276 = vmatprep.subr.mxu0 %v371_v1  ;;  %341 = vmatprep.mubr.msk.f32.mxu1 %vm372_vm0, %v371_v1  ;;  %v137_v7 = vld [vmem:[%s557_s3 + $0x68] sm:$0xff] }
   0x4   :  { %310 = vmatpush3.xpose.msra.mxu1 %v139_v3 }
   0x5   :  { %311 = vmatprep.subr.mxu1 %v371_v1 }
   0x6   :  { %277 = vmatpush3.xpose.msra.mxu0 %v40_v2 }
   0x7   :  { %278 = vmatprep.subr.mxu0 %v371_v1 }
   0x8   :  { %312 = vmatpush3.xpose.msra.mxu1 %v138_v5 }
   0x9   :  { %313 = vmatprep.subr.mxu1 %v371_v1 }
   0xa   :  { %279 = vmatpush3.xpose.msra.mxu0 %v39_v4 }
   0xb   :  { %280 = vmatprep.subr.mxu0 %v371_v1 }
   0xc   :  { %12 = vsyncpa [#allocation4], 0  ;;  %314 = vmatpush3.xpose.msra.mxu1 %v137_v7  ;;  %v37_v8 = vld [vmem:[%s555_s1 + $0x58] sm:$0xff]  ;;  %v136_v9 = vld [vmem:[%s557_s3 + $0x60] sm:$0xff]  ;;  %v121_v36 = vstv %s559_s5 }
   0xd   :  { %315 = vmatprep.subr.mxu1 %v371_v1  ;;  %v36_v10 = vld [vmem:[%s555_s1 + $0x50] sm:$0xff]  ;;  %v135_v11 = vld [vmem:[%s557_s3 + $0x58] sm:$0xff]  ;;  %v35_v12 = vld [vmem:[%s555_s1 + $0x48] sm:$0xff] }
   0xe   :  { %281 = vmatpush3.xpose.msra.mxu0 %v38_v6  ;;  %v134_v13 = vld [vmem:[%s557_s3 + $0x50] sm:$0xff]  ;;  %v34_v14 = vld [vmem:[%s555_s1 + $0x40] sm:$0xff]  ;;  %v133_v15 = vld [vmem:[%s557_s3 + $0x48] sm:$0xff] }
   0xf   :  { %282 = vmatprep.subr.mxu0 %v371_v1  ;;  %v33_v16 = vld [vmem:[%s555_s1 + $0x38] sm:$0xff]  ;;  %v132_v17 = vld [vmem:[%s557_s3 + $0x40] sm:$0xff]  ;;  %v32_v18 = vld [vmem:[%s555_s1 + $0x30] sm:$0xff] }
  0x10   :  { %316 = vmatpush3.xpose.msra.mxu1 %v136_v9  ;;  %v131_v19 = vld [vmem:[%s557_s3 + $0x38] sm:$0xff]  ;;  %v31_v20 = vld [vmem:[%s555_s1 + $0x28] sm:$0xff]  ;;  %v130_v21 = vld [vmem:[%s557_s3 + $0x30] sm:$0xff] }
  0x11   :  { %317 = vmatprep.subr.mxu1 %v371_v1  ;;  %v30_v22 = vld [vmem:[%s555_s1 + $0x20] sm:$0xff]  ;;  %v129_v23 = vld [vmem:[%s557_s3 + $0x28] sm:$0xff]  ;;  %v29_v24 = vld [vmem:[%s555_s1 + $0x18] sm:$0xff] }
  0x12   :  { %283 = vmatpush3.xpose.msra.mxu0 %v37_v8  ;;  %v128_v25 = vld [vmem:[%s557_s3 + $0x20] sm:$0xff]  ;;  %v28_v26 = vld [vmem:[%s555_s1 + $0x10] sm:$0xff]  ;;  %v127_v27 = vld [vmem:[%s557_s3 + $0x18] sm:$0xff] }
  0x13   :  { %284 = vmatprep.subr.mxu0 %v371_v1  ;;  %v27_v28 = vld [vmem:[%s555_s1 + $0x8] sm:$0xff]  ;;  %v126_v29 = vld [vmem:[%s557_s3 + $0x10] sm:$0xff]  ;;  %v26_v30 = vld [vmem:[%s555_s1] sm:$0xff] }
  0x14   :  { %318 = vmatpush3.xpose.msra.mxu1 %v135_v11  ;;  %v125_v31 = vld [vmem:[%s557_s3 + $0x8] sm:$0xff]  ;;  %v25_v32 = vld [vmem:[%s554_s0] sm:$0xff] }
  0x15   :  { %319 = vmatprep.subr.mxu1 %v371_v1  ;;  %v124_v33 = vld [vmem:[%s557_s3] sm:$0xff] }
  0x16   :  { %285 = vmatpush3.xpose.msra.mxu0 %v36_v10  ;;  %v238_v34 = vld [vmem:[%s556_s2] ss:$0 sm:$0xff]  ;;  %s373_s2 = smov [#allocation3]  }
  0x17   :  { %286 = vmatprep.subr.mxu0 %v371_v1  ;;  %v239_v41 = vld [vmem:[%s558_s4] ss:$0 sm:$0xff]  ;;  %s230_s3 = sshll.u32 %s373_s2, 4  ;;  %s231_s3 = int_to_ptr.vmem [resolvable:$true] %s230_s3 }
  0x18   :  { %320 = vmatpush3.xpose.msra.mxu1 %v134_v13  ;;  %s349_s5 = scalar_lea.vmem %s231_s3, 128  ;;  %p354_p1 = scmp.lt.s32.totalorder %s231_s3, %s231_s3 }
  0x19   :  { %321 = vmatprep.subr.mxu1 %v371_v1  ;;  %p350_p0 = scmp.ne.s32.totalorder %s231_s3, %s349_s5  ;;  %p355_p2 = scmp.lt.s32.totalorder %s349_s5, %s349_s5 }
  0x1a   :  { %287 = vmatpush3.xpose.msra.mxu0 %v35_v12 }
  0x1b   :  { %288 = vmatprep.subr.mxu0 %v371_v1  ;;  %p356_p3 = por %p355_p2, %p354_p1 }
  0x1c   :  { %322 = vmatpush3.xpose.msra.mxu1 %v133_v15 }
  0x1d   :  { %323 = vmatprep.subr.mxu1 %v371_v1  ;;  %p357_p4 = pnand %p356_p3, %p350_p0 }
  0x1e   :  { %289 = vmatpush3.xpose.msra.mxu0 %v34_v14 }
  0x1f   :  { %290 = vmatprep.subr.mxu0 %v371_v1 }
  0x20   :  { %324 = vmatpush3.xpose.msra.mxu1 %v132_v17 }
  0x21   :  { %325 = vmatprep.subr.mxu1 %v371_v1 }
  0x22   :  { %291 = vmatpush3.xpose.msra.mxu0 %v33_v16 }
  0x23   :  { %292 = vmatprep.subr.mxu0 %v371_v1 }
  0x24   :  { %326 = vmatpush3.xpose.msra.mxu1 %v131_v19 }
  0x25   :  { %327 = vmatprep.subr.mxu1 %v371_v1 }
  0x26   :  { %293 = vmatpush3.xpose.msra.mxu0 %v32_v18 }
  0x27   :  { %294 = vmatprep.subr.mxu0 %v371_v1 }
  0x28   :  { %328 = vmatpush3.xpose.msra.mxu1 %v130_v21 }
  0x29   :  { %329 = vmatprep.subr.mxu1 %v371_v1 }
  0x2a   :  { %295 = vmatpush3.xpose.msra.mxu0 %v31_v20 }
  0x2b   :  { %296 = vmatprep.subr.mxu0 %v371_v1 }
  0x2c   :  { %330 = vmatpush3.xpose.msra.mxu1 %v129_v23 }
  0x2d   :  { %331 = vmatprep.subr.mxu1 %v371_v1 }
  0x2e   :  { %297 = vmatpush3.xpose.msra.mxu0 %v30_v22 }
  0x2f   :  { %298 = vmatprep.subr.mxu0 %v371_v1 }
  0x30   :  { %332 = vmatpush3.xpose.msra.mxu1 %v128_v25 }
  0x31   :  { %333 = vmatprep.subr.mxu1 %v371_v1 }
  0x32   :  { %299 = vmatpush3.xpose.msra.mxu0 %v29_v24 }
  0x33   :  { %300 = vmatprep.subr.mxu0 %v371_v1 }
  0x34   :  { %334 = vmatpush3.xpose.msra.mxu1 %v127_v27 }
  0x35   :  { %335 = vmatprep.subr.mxu1 %v371_v1 }
  0x36   :  { %301 = vmatpush3.xpose.msra.mxu0 %v28_v26 }
  0x37   :  { %302 = vmatprep.subr.mxu0 %v371_v1 }
  0x38   :  { %336 = vmatpush3.xpose.msra.mxu1 %v126_v29 }
  0x39   :  { %337 = vmatprep.subr.mxu1 %v371_v1 }
  0x3a   :  { %303 = vmatpush3.xpose.msra.mxu0 %v27_v28 }
  0x3b   :  { %304 = vmatprep.subr.mxu0 %v371_v1 }
  0x3c   :  { %338 = vmatpush3.xpose.msra.mxu1 %v125_v31 }
  0x3d   :  { %339 = vmatprep.subr.mxu1 %v371_v1 }
  0x3e   :  { %305 = vmatpush3.xpose.msra.mxu0 %v26_v30 }
  0x40   :  { %340 = vmatpush3.xpose.msra.mxu1 %v124_v33 }
  0x41   :  { %307 = vmatmul.mubr.f32.vlgmr.msra.gmra.mxu0 %v25_v32 }
 0x101   :  { %v115_v35 = vpop.f32.mrf.mxu0 }
 0x102   :  { %v116_v37 = vadd.f32 %v238_v34, %v115_v35 }
 0x103   :  { %v308_v38 = vpop.f32.mrf.mxu0 }
 0x104   :  { %v122_v39 = vmul.f32 %v121_v36, %v116_v37  ;;  %vm120_vm1 = vcmp.ge.f32.partialorder %v116_v37, 0.0 }
 0x106   :  { %v123_v40 = vsel %vm120_vm1, %v116_v37, %v122_v39 }
 0x107   :  { %342 = vmatmul.mubr.f32.vlgmr.msra.gmra.mxu1 %v123_v40 }
 0x1c7   :  { %v213_v42 = vpop.f32.mrf.mxu1 }
 0x1c8   :  { %v214_v43 = vadd.f32 %v239_v41, %v213_v42 }
 0x1c9   :  { %v343_v44 = vpop.f32.mrf.mxu1 }
 0x1ca   :  { %v217_v45 = vmul.f32 %v214_v43, %v214_v43 }
 0x1cc   :  { %218 = vadd.xlane.f32.xlu0 %v217_v45 }
 0x255   :  { %v219_v46 = vpop.xlane.xlu0 %218 }
 0x256   :  { %v220_v47 = vmax.f32 %v219_v46, 1e-24 }
 0x258   :  { %347 = vrsqrt.f32 %v220_v47 }
 0x265   :  { %v348_v48 = vpop.eup %347 }
 0x266   :  { %v222_v49 = vmul.f32 %v348_v48, %v214_v43 }
 0x268   :  { %223 = vst [vmem:[#allocation3] sm:$0xff] %v222_v49 }
 0x269   :  { %360 = shalt.err (!%p357_p4)
}
 0x26a   :  { %233 = dma.vmem_to_hbm [thread:$0]  %s231_s3, 128, %s560_s6, [#allocation4]  }
 0x26b   :  { %369 = dma.done.wait [#allocation4], 128  }
 0x26c   :  { %370 = vsyncadd [#allocation4], 4294967168 }
 0x26d   :  { %237 = vsyncpa [#allocation4], 1 }

</bundles_post_ra>
